<compile_context>
chip_gen: v6e
topology: v6e:2x2x1
jax: 0.10.0
libtpu: 0.0.40
codegen_flags: <defaults>
</compile_context>

<pallas_src>
import functools

import jax
import jax.numpy as jnp
from jax.experimental import pallas as pl
from jax.experimental.pallas import tpu as pltpu

EMBEDDING_DIM = 32   # embedding_dim
HIDE_DIM = 64        # hide_dim
LN_EPS = 1e-5        # torch.nn.LayerNorm default
PACK = 4             # tokens per 128-lane packed row (128 // EMBEDDING_DIM)


def _round_up(n, m):
    return ((n + m - 1) // m) * m


def _ffn_kernel(xp_ref, mavg_ref, w1_ref, b1_ref, w2_ref, b2_ref, o_ref):
    # xp_ref: (RP, 128) f32 tile -- 4 tokens (32 features each) per row.
    xp = xp_ref[...]                     # f32
    mavg = mavg_ref[...]                 # (128, 128) f32 group-averaging matrix
    b1 = b1_ref[...]                     # (1, 256) f32 (tiled x4)
    b2 = b2_ref[...]                     # (1, 128) f32 (tiled x4)

    # --- LayerNorm stats per 32-lane token group (f32, via MXU matmul) ---
    mean = jnp.dot(xp, mavg, preferred_element_type=jnp.float32)
    c = xp - mean
    var = jnp.dot(c * c, mavg, preferred_element_type=jnp.float32)
    xn = c * jax.lax.rsqrt(var + LN_EPS)
    # LN affine (gamma/beta) is folded into w1_ref / b1 in the wrapper.

    # --- Linear(E->H) + ReLU, block-diagonal packed; bf16 MXU, f32 acc ---
    h = jnp.dot(xn.astype(jnp.bfloat16), w1_ref[...],
                preferred_element_type=jnp.float32)
    h = jnp.maximum(h + b1, 0.0)

    # --- Linear(H->E), block-diagonal packed; bf16 MXU, f32 acc ---
    y = jnp.dot(h.astype(jnp.bfloat16), w2_ref[...],
                preferred_element_type=jnp.float32)
    y = y + b2

    # TODO(synk): Dropout(p=0.1) omitted (inference / eval-mode identity).

    # --- residual add (f32), lane-dense unmasked store ---
    o_ref[...] = (xp + y).astype(o_ref.dtype)


@functools.partial(jax.jit, static_argnames=("tm",))
def fully_connected_output(x, gamma, beta, w1, b1, w2, b2, *, tm=8192):
    """x: [B, S, E] float32.  w1: (E, H), w2: (H, E).  Returns [B, S, E]."""
    B, S, E = x.shape
    H = w1.shape[1]
    L = PACK * E                      # 128 packed lane width
    HP = PACK * H                     # 256 packed hidden width
    n_rows = B * S

    # ---- parameter preparation (tiny; done once per call) ----
    # Fold the LayerNorm affine into the first linear (exact: stats use raw x).
    w1f = (gamma[:, None] * w1).astype(jnp.float32)
    b1f = (beta @ w1 + b1).astype(jnp.float32)
    # Block-diagonal packed weights so 4 tokens/row are processed lane-dense.
    eye4 = jnp.eye(PACK, dtype=jnp.float32)
    w1_block = jnp.kron(eye4, w1f).astype(jnp.bfloat16)               # (128, 256)
    w2_block = jnp.kron(eye4, w2.astype(jnp.float32)).astype(jnp.bfloat16)  # (256, 128)
    mavg = jnp.kron(eye4, jnp.full((E, E), 1.0 / E, jnp.float32))     # (128, 128)
    b1_t = jnp.tile(b1f, PACK).reshape(1, HP)
    b2_t = jnp.tile(b2.astype(jnp.float32), PACK).reshape(1, L)

    # ---- pack tokens: (rows, 32) f32 -> (rows/4, 128), a free view when
    # rows % 4 == 0 (pad at most 3 rows otherwise) ----
    x2d = x.reshape(n_rows, E)
    pack_pad = (-n_rows) % PACK
    if pack_pad:
        x2d = jnp.pad(x2d, ((0, pack_pad), (0, 0)))
    rows4 = n_rows + pack_pad
    rp_total = rows4 // PACK
    xp_arr = x2d.reshape(rp_total, L)

    # ---- tile selection: big tiles to amortize the ~0.35us/step overhead,
    # but >=4 grid programs on large inputs so both v7x TCs get work.
    # No pad to the tile size: grid = cdiv, Pallas masks the ragged block. ----
    rp_cap = max(8, tm // PACK)
    if rp_total % 8 != 0 and rp_total <= rp_cap:
        rp_tile = rp_total                      # single full-extent block
    else:
        rp_tile = min(rp_cap, max(8, _round_up(pl.cdiv(rp_total, 4), 8)))
    grid = (pl.cdiv(rp_total, rp_tile),)

    flops = 2 * rp_total * (2 * L * L + L * HP + HP * L)
    bytes_accessed = (2 * rp_total * L * 4            # packed in + out (f32)
                      + L * L * 4                     # averaging matrix
                      + 2 * (L * HP + HP * L)         # bf16 block weights
                      + (HP + L) * 4)                 # biases
    cost = pl.CostEstimate(flops=flops, transcendentals=0,
                           bytes_accessed=bytes_accessed)

    out_packed = pl.pallas_call(
        _ffn_kernel,
        out_shape=jax.ShapeDtypeStruct((rp_total, L), x.dtype),
        grid_spec=pltpu.PrefetchScalarGridSpec(
            num_scalar_prefetch=0,
            grid=grid,
            in_specs=[
                pl.BlockSpec((rp_tile, L), lambda i: (i, 0)),   # packed tokens
                pl.BlockSpec((L, L), lambda i: (0, 0)),         # avg matrix
                pl.BlockSpec((L, HP), lambda i: (0, 0)),        # W1 block-diag bf16
                pl.BlockSpec((1, HP), lambda i: (0, 0)),        # b1 tiled
                pl.BlockSpec((HP, L), lambda i: (0, 0)),        # W2 block-diag bf16
                pl.BlockSpec((1, L), lambda i: (0, 0)),         # b2 tiled
            ],
            out_specs=pl.BlockSpec((rp_tile, L), lambda i: (i, 0)),
        ),
        compiler_params=pltpu.CompilerParams(
            dimension_semantics=("parallel",),
            vmem_limit_bytes=48 * 1024 * 1024),
        cost_estimate=cost,
    )(xp_arr, mavg, w1_block, b1_t, w2_block, b2_t)

    out2d = out_packed.reshape(rows4, E)[:n_rows]
    return out2d.reshape(B, S, E)


def _reference(x, gamma, beta, w1, b1, w2, b2):
    xf = x.astype(jnp.float32)
    mean = jnp.mean(xf, axis=-1, keepdims=True)
    var = jnp.mean((xf - mean) ** 2, axis=-1, keepdims=True)
    xn = (xf - mean) * jax.lax.rsqrt(var + LN_EPS) * gamma + beta
    h = jnp.maximum(xn @ w1 + b1, 0.0)
    y = h @ w2 + b2
    return x + y


if __name__ == "__main__":
    key = jax.random.PRNGKey(0)
    k_x, k_g, k_b, k_w1, k_b1, k_w2, k_b2 = jax.random.split(key, 7)

    B, S, E, H = 2, 8, EMBEDDING_DIM, HIDE_DIM

    x = jax.random.normal(k_x, (B, S, E), dtype=jnp.float32)

    # deterministic synthetic parameters (shapes match torch module __init__)
    gamma = 1.0 + 0.01 * jax.random.normal(k_g, (E,), dtype=jnp.float32)
    beta = 0.01 * jax.random.normal(k_b, (E,), dtype=jnp.float32)
    # torch Linear weight is (out, in); stored transposed (in, out) for kernel
    w1 = jax.random.normal(k_w1, (E, H), dtype=jnp.float32) / jnp.sqrt(E)
    b1 = 0.01 * jax.random.normal(k_b1, (H,), dtype=jnp.float32)
    w2 = jax.random.normal(k_w2, (H, E), dtype=jnp.float32) / jnp.sqrt(H)
    b2 = 0.01 * jax.random.normal(k_b2, (E,), dtype=jnp.float32)

    out = fully_connected_output(x, gamma, beta, w1, b1, w2, b2)
    out = jax.block_until_ready(out)

    ref = _reference(x, gamma, beta, w1, b1, w2, b2)
    assert out.shape == (B, S, E)
    # bf16 MXU operands (f32 accumulation / f32 LN stats) => bf16-level tolerance
    assert jnp.allclose(out, ref, atol=5e-2, rtol=5e-2), (
        "mismatch vs reference: max abs diff = "
        f"{float(jnp.max(jnp.abs(out - ref)))}")

    print("KERNEL_OK")
</pallas_src>

<mosaic_0001>
module attributes {stable_mosaic.version = 11 : i64} {
  func.func @_ffn_kernel(%arg0: i32, %arg1: memref<4x128xf32, #tpu.memory_space<vmem>>, %arg2: memref<128x128xf32, #tpu.memory_space<vmem>>, %arg3: memref<128x256xbf16, #tpu.memory_space<vmem>>, %arg4: memref<1x256xf32, #tpu.memory_space<vmem>>, %arg5: memref<256x128xbf16, #tpu.memory_space<vmem>>, %arg6: memref<1x128xf32, #tpu.memory_space<vmem>>, %arg7: memref<4x128xf32, #tpu.memory_space<vmem>>) attributes {dimension_semantics = [#tpu.dimension_semantics<parallel>], iteration_bounds = array<i64: 1>, scalar_prefetch = 0 : i64, scratch_operands = 0 : i64, tpu.core_type = #tpu.core_type<tc>, window_params = [{transform_indices = @transform_0, window_bounds = array<i64: 4, 128>}, {pipeline_mode = #tpu.pipeline_mode<synchronous>, transform_indices = @transform_1, window_bounds = array<i64: 128, 128>}, {pipeline_mode = #tpu.pipeline_mode<synchronous>, transform_indices = @transform_2, window_bounds = array<i64: 128, 256>}, {pipeline_mode = #tpu.pipeline_mode<synchronous>, transform_indices = @transform_3, window_bounds = array<i64: 1, 256>}, {pipeline_mode = #tpu.pipeline_mode<synchronous>, transform_indices = @transform_4, window_bounds = array<i64: 256, 128>}, {pipeline_mode = #tpu.pipeline_mode<synchronous>, transform_indices = @transform_5, window_bounds = array<i64: 1, 128>}, {transform_indices = @transform_6, window_bounds = array<i64: 4, 128>}]} {
    %c0 = arith.constant 0 : index
    %c0_0 = arith.constant 0 : index
    %0 = vector.load %arg1[%c0, %c0_0] : memref<4x128xf32, #tpu.memory_space<vmem>>, vector<4x128xf32>
    %c0_1 = arith.constant 0 : index
    %c0_2 = arith.constant 0 : index
    %1 = vector.load %arg2[%c0_1, %c0_2] : memref<128x128xf32, #tpu.memory_space<vmem>>, vector<128x128xf32>
    %c0_3 = arith.constant 0 : index
    %c0_4 = arith.constant 0 : index
    %2 = vector.load %arg4[%c0_3, %c0_4] : memref<1x256xf32, #tpu.memory_space<vmem>>, vector<1x256xf32>
    %c0_5 = arith.constant 0 : index
    %c0_6 = arith.constant 0 : index
    %3 = vector.load %arg6[%c0_5, %c0_6] : memref<1x128xf32, #tpu.memory_space<vmem>>, vector<1x128xf32>
    %cst = arith.constant dense<0.000000e+00> : vector<4x128xf32>
    %4 = tpu.matmul %0, %1, %cst {dimension_numbers = #tpu.dot_dimension_numbers<[1], [0], [0], [1], [0, 0, 1, 1], [], []>} : vector<4x128xf32>, vector<128x128xf32>, vector<4x128xf32> -> vector<4x128xf32>
    %5 = arith.subf %0, %4 : vector<4x128xf32>
    %6 = arith.mulf %5, %5 : vector<4x128xf32>
    %cst_7 = arith.constant dense<0.000000e+00> : vector<4x128xf32>
    %7 = tpu.matmul %6, %1, %cst_7 {dimension_numbers = #tpu.dot_dimension_numbers<[1], [0], [0], [1], [0, 0, 1, 1], [], []>} : vector<4x128xf32>, vector<128x128xf32>, vector<4x128xf32> -> vector<4x128xf32>
    %cst_8 = arith.constant 9.99999974E-6 : f32
    %8 = vector.broadcast %cst_8 : f32 to vector<4x128xf32>
    %9 = arith.addf %7, %8 : vector<4x128xf32>
    %10 = math.rsqrt %9 : vector<4x128xf32>
    %11 = arith.mulf %5, %10 : vector<4x128xf32>
    %12 = arith.truncf %11 : vector<4x128xf32> to vector<4x128xbf16>
    %c0_9 = arith.constant 0 : index
    %c0_10 = arith.constant 0 : index
    %13 = vector.load %arg3[%c0_9, %c0_10] : memref<128x256xbf16, #tpu.memory_space<vmem>>, vector<128x256xbf16>
    %cst_11 = arith.constant dense<0.000000e+00> : vector<4x256xf32>
    %14 = tpu.matmul %12, %13, %cst_11 {dimension_numbers = #tpu.dot_dimension_numbers<[1], [0], [0], [1], [0, 0, 1, 1], [], []>} : vector<4x128xbf16>, vector<128x256xbf16>, vector<4x256xf32> -> vector<4x256xf32>
    %15 = vector.broadcast %2 : vector<1x256xf32> to vector<4x256xf32>
    %16 = arith.addf %14, %15 : vector<4x256xf32>
    %cst_12 = arith.constant 0.000000e+00 : f32
    %17 = vector.broadcast %cst_12 : f32 to vector<4x256xf32>
    %18 = arith.maximumf %16, %17 : vector<4x256xf32>
    %19 = arith.truncf %18 : vector<4x256xf32> to vector<4x256xbf16>
    %c0_13 = arith.constant 0 : index
    %c0_14 = arith.constant 0 : index
    %20 = vector.load %arg5[%c0_13, %c0_14] : memref<256x128xbf16, #tpu.memory_space<vmem>>, vector<256x128xbf16>
    %cst_15 = arith.constant dense<0.000000e+00> : vector<4x128xf32>
    %21 = tpu.matmul %19, %20, %cst_15 {dimension_numbers = #tpu.dot_dimension_numbers<[1], [0], [0], [1], [0, 0, 1, 1], [], []>} : vector<4x256xbf16>, vector<256x128xbf16>, vector<4x128xf32> -> vector<4x128xf32>
    %22 = vector.broadcast %3 : vector<1x128xf32> to vector<4x128xf32>
    %23 = arith.addf %21, %22 : vector<4x128xf32>
    %24 = arith.addf %0, %23 : vector<4x128xf32>
    %c0_16 = arith.constant 0 : index
    %c0_17 = arith.constant 0 : index
    %25 = vector.load %arg7[%c0_16, %c0_17] : memref<4x128xf32, #tpu.memory_space<vmem>>, vector<4x128xf32>
    tpu.vector_store %arg7[%c0_16, %c0_17], %24 {strides = array<i32>} : memref<4x128xf32, #tpu.memory_space<vmem>>, vector<4x128xf32>,
    return
  }
  func.func @transform_0(%arg0: i32) -> (i32, i32) {
    %c0_i32 = arith.constant 0 : i32
    %c0_i32_0 = arith.constant 0 : i32
    return %arg0, %c0_i32 : i32, i32
  }
  func.func @transform_1(%arg0: i32) -> (i32, i32) {
    %c0_i32 = arith.constant 0 : i32
    %c0_i32_0 = arith.constant 0 : i32
    %c0_i32_1 = arith.constant 0 : i32
    return %c0_i32, %c0_i32_0 : i32, i32
  }
  func.func @transform_2(%arg0: i32) -> (i32, i32) {
    %c0_i32 = arith.constant 0 : i32
    %c0_i32_0 = arith.constant 0 : i32
    %c0_i32_1 = arith.constant 0 : i32
    return %c0_i32, %c0_i32_0 : i32, i32
  }
  func.func @transform_3(%arg0: i32) -> (i32, i32) {
    %c0_i32 = arith.constant 0 : i32
    %c0_i32_0 = arith.constant 0 : i32
    %c0_i32_1 = arith.constant 0 : i32
    return %c0_i32, %c0_i32_0 : i32, i32
  }
  func.func @transform_4(%arg0: i32) -> (i32, i32) {
    %c0_i32 = arith.constant 0 : i32
    %c0_i32_0 = arith.constant 0 : i32
    %c0_i32_1 = arith.constant 0 : i32
    return %c0_i32, %c0_i32_0 : i32, i32
  }
  func.func @transform_5(%arg0: i32) -> (i32, i32) {
    %c0_i32 = arith.constant 0 : i32
    %c0_i32_0 = arith.constant 0 : i32
    %c0_i32_1 = arith.constant 0 : i32
    return %c0_i32, %c0_i32_0 : i32, i32
  }
  func.func @transform_6(%arg0: i32) -> (i32, i32) {
    %c0_i32 = arith.constant 0 : i32
    %c0_i32_0 = arith.constant 0 : i32
    return %arg0, %c0_i32 : i32, i32
  }
}

</mosaic_0001>

<bundles_post_ra>
// kernel: tile.13
= control target key start
LH: loop header
LB: loop body
LE: loop exit
PB: predicated region body
PF: predicated region fallthrough
CT: control target
= control target key end

     0   :  { %s22_s0 = inlined_call_operand.vmem [shape: f32[64], index: 0, kind: input, shape index: {}]   ;;  %s23_s1 = inlined_call_operand.vmem [shape: f32[4,64], index: 1, kind: output, shape index: {}]  }
   0x1   :  { %v4_v0 = vld [vmem:[%s22_s0] ss:$0 sm:$0xff] }
   0x2   :  { %5 = vst [vmem:[%s23_s1] sm:$0xf] %v4_v0 }

// kernel: tile.14
= control target key start
LH: loop header
LB: loop body
LE: loop exit
PB: predicated region body
PF: predicated region fallthrough
CT: control target
= control target key end

     0   :  { %s7_s8 = smov 3  ;;  %vm9_vm0 = vcmask 523264   ;;  %s34_s9 = smov 64   ;;  %vm16_vm1 = vcmask 1048064   ;;  %s54_s0 = inlined_call_operand.vmem [shape: f32[4,64], index: 0, kind: input, shape index: {}]   ;;  %s55_s1 = inlined_call_operand.vmem [shape: f32[1,256], index: 1, kind: output, shape index: {}]  }
   0x1   :  { %v5_v0 = vld [vmem:[%s54_s0] sm:$0xf]  ;;  %s12_s0 = smov 3 }
   0x2   :  { %6 = vst [vmem:[#allocation1] sm:$0xf] %v5_v0 }
   0x9   :  { %v13_v1 = vld [vmem:[#allocation1 + $0x1] ss:$2 sm:%s12_s0]   ;;  %v8_v2 = vld [vmem:[#allocation1] ss:$2 sm:%s7_s8]  }
   0xa   :  { %14 = vrot.lane.b32.xlu0 %v13_v1, %s34_s9  ;;  %10 = vst.msk [vmem:[#allocation0] ss:$8 sm:$0x3] %vm9_vm0, %v8_v2  }
  0x7c   :  { %v15_v3 = vpop.permute.xlu0 %14  }
  0x7d   :  { %17 = vst.msk [vmem:[#allocation0] ss:$8 sm:$0x3] %vm16_vm1, %v15_v3  }
  0x84   :  { %v22_v4 = vld [vmem:[#allocation0] sm:$0x1]  ;;  %v27_v5 = vld [vmem:[#allocation0 + $0x8] sm:$0x1] }
  0x85   :  { %25 = vst [vmem:[%s55_s1] sm:$0x1] %v22_v4  ;;  %32 = vst [vmem:[%s55_s1 + $0x1] sm:$0x1] %v27_v5 }

// kernel: tile.18
= control target key start
LH: loop header
LB: loop body
LE: loop exit
PB: predicated region body
PF: predicated region fallthrough
CT: control target
= control target key end

     0   :  { %s22_s0 = inlined_call_operand.vmem [shape: f32[32], index: 0, kind: input, shape index: {}]   ;;  %s23_s1 = inlined_call_operand.vmem [shape: f32[4,32], index: 1, kind: output, shape index: {}]  }
   0x1   :  { %v4_v0 = vld [vmem:[%s22_s0] ss:$0 sm:$0xff] }
   0x2   :  { %5 = vst [vmem:[%s23_s1] sm:$0xf] %v4_v0 }

// kernel: tile.19
= control target key start
LH: loop header
LB: loop body
LE: loop exit
PB: predicated region body
PF: predicated region fallthrough
CT: control target
= control target key end

     0   :  { %vm8_vm0 = vcmask 261120   ;;  %s40_s8 = smov 32   ;;  %s41_s9 = smov 64   ;;  %vm14_vm1 = vcmask 1048320   ;;  %vm20_vm2 = vcmask 785920   ;;  %vm26_vm3 = vcmask 523520   ;;  %s58_s0 = inlined_call_operand.vmem [shape: f32[4,32], index: 0, kind: input, shape index: {}]   ;;  %s59_s1 = inlined_call_operand.vmem [shape: f32[1,128], index: 1, kind: output, shape index: {}]  }
   0x1   :  { %v5_v0 = vld [vmem:[%s58_s0] sm:$0xf]  ;;  %s39_s0 = smov 96  }
   0x2   :  { %6 = vst [vmem:[#allocation1] sm:$0xf] %v5_v0 }
   0x9   :  { %v11_v1 = vld [vmem:[#allocation1 + $0x3] sm:$0x1]   ;;  %v23_v2 = vld [vmem:[#allocation1 + $0x1] sm:$0x1]   ;;  %v7_v3 = vld [vmem:[#allocation1] sm:$0x1]  }
   0xa   :  { %12 = vrot.lane.b32.xlu0 %v11_v1, %s39_s0  ;;  %24 = vrot.lane.b32.xlu1 %v23_v2, %s40_s8  ;;  %v17_v4 = vld [vmem:[#allocation1 + $0x2] sm:$0x1]   ;;  %9 = vst.msk [vmem:[#allocation0] sm:$0x1] %vm8_vm0, %v7_v3  }
   0xe   :  { %18 = vrot.lane.b32.xlu0 %v17_v4, %s41_s9 }
  0x7c   :  { %v13_v5 = vpop.permute.xlu0 %12   ;;  %v25_v6 = vpop.permute.xlu1 %24  }
  0x7d   :  { %15 = vst.msk [vmem:[#allocation0] sm:$0x1] %vm14_vm1, %v13_v5  }
  0x80   :  { %v19_v7 = vpop.permute.xlu0 %18  }
  0x81   :  { %21 = vst.msk [vmem:[#allocation0] sm:$0x1] %vm20_vm2, %v19_v7  }
  0x82   :  { %27 = vst.msk [vmem:[#allocation0] sm:$0x1] %vm26_vm3, %v25_v6  }
  0x89   :  { %v32_v8 = vld [vmem:[#allocation0] sm:$0x1] }
  0x8a   :  { %35 = vst [vmem:[%s59_s1] sm:$0x1] %v32_v8 }

// kernel: fully_connected_output.1
= control target key start
LH: loop header
LB: loop body
LE: loop exit
PB: predicated region body
PF: predicated region fallthrough
CT: control target
= control target key end

     0   :  { %v724_v0 = vmov 0.0   ;;  %vm725_vm0 = vmmov 0   ;;  %v726_v34 = vmov 0   ;;  %v205_v61 = vlaneseq  ;;  %s959_s1 = inlined_call_operand.vmem [shape: f32[128,128], index: 1, kind: input, shape index: {}]   ;;  %s960_s0 = inlined_call_operand.vmem [shape: f32[4,128], index: 0, kind: input, shape index: {}]   ;;  %s961_s2 = inlined_call_operand.vmem [shape: bf16[128,256], index: 2, kind: input, shape index: {}]   ;;  %s962_s4 = inlined_call_operand.vmem [shape: bf16[256,128], index: 4, kind: input, shape index: {}]   ;;  %s963_s3 = inlined_call_operand.vmem [shape: f32[1,256], index: 3, kind: input, shape index: {}]   ;;  %s964_s5 = inlined_call_operand.vmem [shape: f32[1,128], index: 5, kind: input, shape index: {}]   ;;  %s965_s6 = inlined_call_operand.vmem [shape: f32[4,128], index: 6, kind: output, shape index: {}]  }
   0x1   :  { %609 = vmatprep.subr.mxu0 %v724_v0  ;;  %v40_v1 = vld [vmem:[%s959_s1 + $0x78] sm:$0xff]  ;;  %v39_v2 = vld [vmem:[%s959_s1 + $0x70] sm:$0xff]  ;;  %641 = vmatprep.mubr.msk.f32.mxu0 %vm725_vm0, %v724_v0  ;;  %v38_v3 = vld [vmem:[%s959_s1 + $0x68] sm:$0xff] }
   0x2   :  { %610 = vmatpush3.msra.mxu0 %v40_v1  ;;  %644 = vmatprep.subr.mxu1 %v724_v0  ;;  %v37_v4 = vld [vmem:[%s959_s1 + $0x60] sm:$0xff]  ;;  %v36_v5 = vld [vmem:[%s959_s1 + $0x58] sm:$0xff]  ;;  %v35_v6 = vld [vmem:[%s959_s1 + $0x50] sm:$0xff]  ;;  %v206_v62 = vshrl.u32 %v205_v61, 7 }
   0x3   :  { %611 = vmatprep.subr.mxu0 %v724_v0  ;;  %645 = vmatpush3.msra.mxu1 %v40_v1  ;;  %v34_v7 = vld [vmem:[%s959_s1 + $0x48] sm:$0xff]  ;;  %v33_v8 = vld [vmem:[%s959_s1 + $0x40] sm:$0xff]  ;;  %v32_v9 = vld [vmem:[%s959_s1 + $0x38] sm:$0xff] }
   0x4   :  { %612 = vmatpush3.msra.mxu0 %v39_v2  ;;  %646 = vmatprep.subr.mxu1 %v724_v0  ;;  %v31_v10 = vld [vmem:[%s959_s1 + $0x30] sm:$0xff]  ;;  %v30_v11 = vld [vmem:[%s959_s1 + $0x28] sm:$0xff]  ;;  %v29_v12 = vld [vmem:[%s959_s1 + $0x20] sm:$0xff]  ;;  %v207_v63 = vsub.s32 0, %v206_v62  ;;  %v211_v1 = vsub.s32 1, %v206_v62 }
   0x5   :  { %613 = vmatprep.subr.mxu0 %v724_v0  ;;  %647 = vmatpush3.msra.mxu1 %v39_v2  ;;  %v28_v13 = vld [vmem:[%s959_s1 + $0x18] sm:$0xff]  ;;  %v27_v14 = vld [vmem:[%s959_s1 + $0x10] sm:$0xff]  ;;  %v26_v15 = vld [vmem:[%s959_s1 + $0x8] sm:$0xff] }
   0x6   :  { %614 = vmatpush3.msra.mxu0 %v38_v3  ;;  %648 = vmatprep.subr.mxu1 %v724_v0  ;;  %v25_v16 = vld [vmem:[%s959_s1] sm:$0xff]  ;;  %v682_v18 = vld [vmem:[%s961_s2 + $0x70] ss:$8 sps:$4 sm:$0xff]   ;;  %v684_v19 = vld [vmem:[%s961_s2 + $0x74] ss:$8 sps:$4 sm:$0xff]  }
   0x7   :  { %615 = vmatprep.subr.mxu0 %v724_v0  ;;  %649 = vmatpush3.msra.mxu1 %v38_v3  ;;  %v844_v17 = vld [vmem:[%s960_s0] sm:$0xf]  ;;  %v687_v20 = vld [vmem:[%s961_s2 + $0x64] ss:$8 sps:$4 sm:$0xff]   ;;  %v690_v22 = vld [vmem:[%s961_s2 + $0x54] ss:$8 sps:$4 sm:$0xff]  }
   0x8   :  { %616 = vmatpush3.msra.mxu0 %v37_v4  ;;  %650 = vmatprep.subr.mxu1 %v724_v0  ;;  %v685_v21 = vld [vmem:[%s961_s2 + $0x60] ss:$8 sps:$4 sm:$0xff]   ;;  %v688_v23 = vld [vmem:[%s961_s2 + $0x50] ss:$8 sps:$4 sm:$0xff]   ;;  %v693_v28 = vld [vmem:[%s961_s2 + $0x44] ss:$8 sps:$4 sm:$0xff]  }
   0x9   :  { %617 = vmatprep.subr.mxu0 %v724_v0  ;;  %651 = vmatpush3.msra.mxu1 %v37_v4  ;;  %v691_v29 = vld [vmem:[%s961_s2 + $0x40] ss:$8 sps:$4 sm:$0xff]   ;;  %v694_v30 = vld [vmem:[%s961_s2 + $0x30] ss:$8 sps:$4 sm:$0xff]   ;;  %v696_v31 = vld [vmem:[%s961_s2 + $0x34] ss:$8 sps:$4 sm:$0xff]  }
   0xa   :  { %618 = vmatpush3.msra.mxu0 %v36_v5  ;;  %652 = vmatprep.subr.mxu1 %v724_v0  ;;  %v699_v32 = vld [vmem:[%s961_s2 + $0x24] ss:$8 sps:$4 sm:$0xff]   ;;  %v697_v33 = vld [vmem:[%s961_s2 + $0x20] ss:$8 sps:$4 sm:$0xff]   ;;  %v702_v35 = vld [vmem:[%s961_s2 + $0x14] ss:$8 sps:$4 sm:$0xff]  }
   0xb   :  { %619 = vmatprep.subr.mxu0 %v724_v0  ;;  %653 = vmatpush3.msra.mxu1 %v36_v5  ;;  %v700_v36 = vld [vmem:[%s961_s2 + $0x10] ss:$8 sps:$4 sm:$0xff]   ;;  %v705_v37 = vld [vmem:[%s961_s2 + $0x4] ss:$8 sps:$4 sm:$0xff]   ;;  %v703_v38 = vld [vmem:[%s961_s2] ss:$8 sps:$4 sm:$0xff]  }
   0xc   :  { %620 = vmatpush3.msra.mxu0 %v35_v6  ;;  %654 = vmatprep.subr.mxu1 %v724_v0  ;;  %v706_v39 = vld [vmem:[%s962_s4 + $0x78] sm:$0xff]   ;;  %v708_v41 = vld [vmem:[%s962_s4 + $0x70] sm:$0xff]   ;;  %v710_v43 = vld [vmem:[%s962_s4 + $0x68] sm:$0xff]  }
   0xd   :  { %621 = vmatprep.subr.mxu0 %v724_v0  ;;  %655 = vmatpush3.msra.mxu1 %v35_v6  ;;  %v707_v40 = vld [vmem:[%s962_s4 + $0x38] sm:$0xff]   ;;  %v709_v42 = vld [vmem:[%s962_s4 + $0x30] sm:$0xff]   ;;  %v711_v44 = vld [vmem:[%s962_s4 + $0x28] sm:$0xff]  }
   0xe   :  { %622 = vmatpush3.msra.mxu0 %v34_v7  ;;  %656 = vmatprep.subr.mxu1 %v724_v0  ;;  %v712_v45 = vld [vmem:[%s962_s4 + $0x60] sm:$0xff]   ;;  %v714_v47 = vld [vmem:[%s962_s4 + $0x58] sm:$0xff]   ;;  %v716_v49 = vld [vmem:[%s962_s4 + $0x50] sm:$0xff]  }
   0xf   :  { %623 = vmatprep.subr.mxu0 %v724_v0  ;;  %657 = vmatpush3.msra.mxu1 %v34_v7  ;;  %v713_v46 = vld [vmem:[%s962_s4 + $0x20] sm:$0xff]   ;;  %v715_v48 = vld [vmem:[%s962_s4 + $0x18] sm:$0xff]   ;;  %v717_v50 = vld [vmem:[%s962_s4 + $0x10] sm:$0xff]  }
  0x10   :  { %624 = vmatpush3.msra.mxu0 %v33_v8  ;;  %658 = vmatprep.subr.mxu1 %v724_v0  ;;  %v718_v57 = vld [vmem:[%s962_s4 + $0x48] sm:$0xff]   ;;  %v720_v59 = vld [vmem:[%s962_s4 + $0x40] sm:$0xff]  }
  0x11   :  { %625 = vmatprep.subr.mxu0 %v724_v0  ;;  %659 = vmatpush3.msra.mxu1 %v33_v8  ;;  %v719_v58 = vld [vmem:[%s962_s4 + $0x8] sm:$0xff]   ;;  %v721_v60 = vld [vmem:[%s962_s4] sm:$0xff]  }
  0x12   :  { %626 = vmatpush3.msra.mxu0 %v32_v9  ;;  %660 = vmatprep.subr.mxu1 %v724_v0 }
  0x13   :  { %627 = vmatprep.subr.mxu0 %v724_v0  ;;  %661 = vmatpush3.msra.mxu1 %v32_v9 }
  0x14   :  { %628 = vmatpush3.msra.mxu0 %v31_v10  ;;  %662 = vmatprep.subr.mxu1 %v724_v0 }
  0x15   :  { %629 = vmatprep.subr.mxu0 %v724_v0  ;;  %663 = vmatpush3.msra.mxu1 %v31_v10 }
  0x16   :  { %630 = vmatpush3.msra.mxu0 %v30_v11  ;;  %664 = vmatprep.subr.mxu1 %v724_v0 }
  0x17   :  { %631 = vmatprep.subr.mxu0 %v724_v0  ;;  %665 = vmatpush3.msra.mxu1 %v30_v11 }
  0x18   :  { %632 = vmatpush3.msra.mxu0 %v29_v12  ;;  %666 = vmatprep.subr.mxu1 %v724_v0 }
  0x19   :  { %633 = vmatprep.subr.mxu0 %v724_v0  ;;  %667 = vmatpush3.msra.mxu1 %v29_v12 }
  0x1a   :  { %634 = vmatpush3.msra.mxu0 %v28_v13  ;;  %668 = vmatprep.subr.mxu1 %v724_v0 }
  0x1b   :  { %635 = vmatprep.subr.mxu0 %v724_v0  ;;  %669 = vmatpush3.msra.mxu1 %v28_v13 }
  0x1c   :  { %636 = vmatpush3.msra.mxu0 %v27_v14  ;;  %670 = vmatprep.subr.mxu1 %v724_v0 }
  0x1d   :  { %637 = vmatprep.subr.mxu0 %v724_v0  ;;  %671 = vmatpush3.msra.mxu1 %v27_v14 }
  0x1e   :  { %638 = vmatpush3.msra.mxu0 %v26_v15  ;;  %672 = vmatprep.subr.mxu1 %v724_v0 }
  0x1f   :  { %639 = vmatprep.subr.mxu0 %v724_v0  ;;  %673 = vmatpush3.msra.mxu1 %v26_v15  ;;  %v536_v15 = vld [vmem:[%s964_s5] ss:$0 sm:$0xff] }
  0x20   :  { %640 = vmatpush3.msra.mxu0 %v25_v16  ;;  %674 = vmatprep.subr.mxu1 %v724_v0 }
  0x21   :  { %642 = vmatmul.mubr.f32.vlgmr.msra.gmra.mxu0 %v844_v17  ;;  %675 = vmatpush3.msra.mxu1 %v25_v16 }
  0x22   :  { %676 = vmatprep.mubr.msk.f32.mxu1 %vm725_vm0, %v724_v0  ;;  %295 = vmatprep.subr.bf16.mxu0 %v684_v19  ;;  %v41_v0 = vld [vmem:[%s963_s3] sm:$0x3] }
  0x23   :  { %296 = vmatpush1.bf16.msra.mxu0 %v682_v18  ;;  %327 = vmatprep.mubr.bf16.mxu0 %v726_v34  ;;  %v208_v2 = vrot.slane %v41_v0, %v207_v63  ;;  %v212_v3 = vrot.slane %v41_v0, %v211_v1 }
  0x24   :  { %297 = vmatprep.subr.bf16.mxu0 %v687_v20  ;;  %587 = vmatprep.subr.bf16.mxu1 %v706_v39 }
  0x27   :  { %298 = vmatpush1.bf16.msra.mxu0 %v685_v21 }
  0x28   :  { %299 = vmatprep.subr.bf16.mxu0 %v690_v22 }
  0x2b   :  { %300 = vmatpush1.bf16.msra.mxu0 %v688_v23 }
  0x2c   :  { %301 = vmatprep.subr.bf16.mxu0 %v693_v28 }
  0x2f   :  { %302 = vmatpush1.bf16.msra.mxu0 %v691_v29 }
  0x30   :  { %303 = vmatprep.subr.bf16.mxu0 %v696_v31 }
  0x33   :  { %304 = vmatpush1.bf16.msra.mxu0 %v694_v30 }
  0x34   :  { %305 = vmatprep.subr.bf16.mxu0 %v699_v32 }
  0x37   :  { %306 = vmatpush1.bf16.msra.mxu0 %v697_v33 }
  0x38   :  { %307 = vmatprep.subr.bf16.mxu0 %v702_v35 }
  0x3b   :  { %308 = vmatpush1.bf16.msra.mxu0 %v700_v36 }
  0x3c   :  { %309 = vmatprep.subr.bf16.mxu0 %v705_v37 }
  0x3f   :  { %310 = vmatpush1.bf16.msra.mxu0 %v703_v38 }
  0xe1   :  { %v109_v24 = vpop.f32.mrf.mxu0 }
  0xe2   :  { %v113_v25 = vsub.f32 %v844_v17, %v109_v24 }
  0xe3   :  { %v643_v26 = vpop.f32.mrf.mxu0 }
  0xe4   :  { %v114_v27 = vmul.f32 %v113_v25, %v113_v25 }
  0xe6   :  { %677 = vmatmul.mubr.f32.vlgmr.msra.gmra.mxu1 %v114_v27 }
  0xe7   :  { %588 = vmatpush3.bf16.msra.mxu1 %v707_v40 }
  0xe8   :  { %589 = vmatprep.subr.bf16.mxu1 %v708_v41 }
  0xeb   :  { %590 = vmatpush3.bf16.msra.mxu1 %v709_v42 }
  0xec   :  { %591 = vmatprep.subr.bf16.mxu1 %v710_v43 }
  0xef   :  { %592 = vmatpush3.bf16.msra.mxu1 %v711_v44 }
  0xf0   :  { %593 = vmatprep.subr.bf16.mxu1 %v712_v45 }
  0xf3   :  { %594 = vmatpush3.bf16.msra.mxu1 %v713_v46 }
  0xf4   :  { %595 = vmatprep.subr.bf16.mxu1 %v714_v47 }
  0xf7   :  { %596 = vmatpush3.bf16.msra.mxu1 %v715_v48 }
  0xf8   :  { %597 = vmatprep.subr.bf16.mxu1 %v716_v49 }
  0xfb   :  { %598 = vmatpush3.bf16.msra.mxu1 %v717_v50 }
  0xfc   :  { %599 = vmatprep.subr.bf16.mxu1 %v718_v57 }
  0xff   :  { %600 = vmatpush3.bf16.msra.mxu1 %v719_v58 }
 0x100   :  { %601 = vmatprep.subr.bf16.mxu1 %v720_v59 }
 0x103   :  { %602 = vmatpush3.bf16.msra.mxu1 %v721_v60 }
 0x1a6   :  { %v181_v51 = vpop.f32.mrf.mxu1 }
 0x1a7   :  { %v182_v52 = vadd.f32 1e-05, %v181_v51 }
 0x1a8   :  { %v678_v53 = vpop.f32.mrf.mxu1 }
 0x1a9   :  { %722 = vrsqrt.f32 %v182_v52 }
 0x1b6   :  { %v723_v54 = vpop.eup %722 }
 0x1b7   :  { %v186_v55 = vmul.f32 %v723_v54, %v113_v25 }
 0x1b9   :  { %v187_v56 = vpack.c.bf16 %v186_v55, %v186_v55 }
 0x1bb   :  { %328 = vmatmul.mubr.bf16.vlgmr.msra.gmra.mxu0 %v187_v56 }
 0x27b   :  { %v329_v4 = vpop.f32.mrf.mxu0 }
 0x27c   :  { %v330_v5 = vadd.f32 %v329_v4, %v208_v2 }
 0x27d   :  { %v331_v6 = vpop.f32.mrf.mxu0 }
 0x27e   :  { %v332_v7 = vadd.f32 %v331_v6, %v212_v3  ;;  %v336_v8 = vmax.f32 %v330_v5, 0.0 }
 0x27f   :  { %v333_v9 = vpop.f32.mrf.mxu0 }
 0x280   :  { %v337_v10 = vmax.f32 %v332_v7, 0.0  ;;  %v338_v13 = vpack.c.bf16 %v336_v8, %v336_v8 }
 0x281   :  { %v334_v11 = vpop.f32.mrf.mxu0 }
 0x282   :  { %v339_v12 = vpack.c.bf16 %v337_v10, %v337_v10 }
 0x284   :  { %506 = vmatprep.mubr.bf16.mxu1 %v339_v12 }
 0x285   :  { %507 = vmatmul.mubr.bf16.vlgmr.msra.gmra.mxu1 %v338_v13 }
 0x345   :  { %v603_v14 = vpop.f32.mrf.mxu1 }
 0x347   :  { %v604_v16 = vpop.f32.mrf.mxu1 }
 0x348   :  { %v605_v18 = vadd.f32 %v604_v16, %v603_v14 }
 0x349   :  { %v606_v19 = vpop.f32.mrf.mxu1 }
 0x34a   :  { %v509_v20 = vadd.f32 %v605_v18, %v536_v15 }
 0x34b   :  { %v607_v21 = vpop.f32.mrf.mxu1 }
 0x34c   :  { %v514_v22 = vadd.f32 %v509_v20, %v844_v17 }
 0x34e   :  { %515 = vst [vmem:[%s965_s6] sm:$0xf] %v514_v22 }

</bundles_post_ra>
